<compile_context>
chip_gen: v6e
topology: v6e:2x2x1
jax: 0.10.0
libtpu: 0.0.40
codegen_flags: <defaults>
</compile_context>

<pallas_src>
import functools

import jax
import jax.numpy as jnp
from jax import lax
from jax.experimental import pallas as pl
from jax.experimental.pallas import tpu as pltpu

# ---- module-level constants implied by the PyTorch module ----
D_MODEL = 32
VOCAB_SIZE = 64
MAX_SEQ_LEN = 16
FF_DROPOUT = 0.1


def _build_positional_encoding(seq_len: int, d_model: int) -> jnp.ndarray:
    """Replicates PositionalEncoding.__init__ exactly (note: the reference code
    MULTIPLIES positions by 10000^(2i/d), it does not divide)."""
    positions = jnp.arange(seq_len, dtype=jnp.float32)[:, None]          # (S, 1)
    even_i = jnp.arange(0, d_model, 2, dtype=jnp.float32)                # (D/2,)
    div_freqs_term = jnp.power(10000.0, even_i / d_model)                # (D/2,)
    pe = jnp.zeros((seq_len, d_model), dtype=jnp.float32)
    pe = pe.at[:, 0::2].set(jnp.sin(positions * div_freqs_term))
    pe = pe.at[:, 1::2].set(jnp.cos(positions * div_freqs_term))
    return pe


def _input_embed_kernel(ids_ref, emb_ref, pe_ref, *rest, apply_dropout: bool, dropout_p: float):
    # ids_ref : (R, G*V) int32   -- token id of column c's group, pre-offset by (c // V) * V
    # emb_ref : (G*V, G*D) f32   -- block-diagonal embedding table (kron(eye(G), emb))
    # pe_ref  : (R, G*D)  f32    -- positional encodings, already batched + lane-packed
    # bits_ref: (R, G*D)  uint32 -- dropout random bits (only when apply_dropout)
    # out_ref : (R, G*D)  f32    -- lane-dense output slab
    if apply_dropout:
        bits_ref, out_ref = rest
    else:
        (out_ref,) = rest

    rows, gv = ids_ref.shape
    col = lax.broadcasted_iota(jnp.int32, (rows, gv), dimension=1)        # column index
    one_hot = (ids_ref[...] == col).astype(emb_ref.dtype)                 # (R, G*V) exact one-hot

    # Embedding gather as a single MXU matmul (exact: one-hot selects rows).
    tok = jnp.dot(one_hot, emb_ref[...], preferred_element_type=jnp.float32)   # (R, G*D)
    val = tok + pe_ref[...]                                                    # add PE

    if apply_dropout:
        # Inverted dropout: keep with prob (1 - p), scale kept values by 1/(1-p).
        # Integer threshold compare on raw uint32 bits (no shift/convert/mul).
        thresh = min(int(round(dropout_p * (2 ** 32))), 2 ** 32 - 1)
        keep = bits_ref[...] >= jnp.uint32(thresh)
        val = jnp.where(keep, val * jnp.float32(1.0 / (1.0 - dropout_p)), jnp.float32(0.0))

    out_ref[...] = val.astype(out_ref.dtype)


def input_embeddings(x_ids: jnp.ndarray,
                     emb_table: jnp.ndarray,
                     pe_full: jnp.ndarray,
                     *,
                     dropout_p: float = FF_DROPOUT,
                     training: bool = False,
                     rng_key=None) -> jnp.ndarray:
    B, S = x_ids.shape
    V, D = emb_table.shape
    BS = B * S

    # Lane packing: put G tokens per 128-lane output row when the shapes allow it,
    # otherwise fall back to one token per row (G = 1).
    if D <= 128 and 128 % D == 0 and BS % (128 // D) == 0:
        G = 128 // D
    else:
        G = 1
    R = BS // G          # output rows
    C = G * D            # output lanes (128 when packed)

    # ---- wrapper-side layout plumbing (plain JAX, outside the kernel) ----
    # ids, grouped G per row and pre-offset by group*V so the kernel can compare
    # directly against a plain column iota.
    ids_grp = x_ids.reshape(R, G).astype(jnp.int32) + (jnp.arange(G, dtype=jnp.int32) * V)[None, :]
    ids_exp = jnp.repeat(ids_grp, V, axis=1)                               # (R, G*V)

    # Block-diagonal embedding table so one matmul produces the lane-packed layout.
    emb_bd = jnp.kron(jnp.eye(G, dtype=emb_table.dtype), emb_table) if G > 1 else emb_table  # (G*V, C)

    # PE sliced to S (as in PyTorch), tiled over batch, lane-packed.
    pe = jnp.tile(pe_full[:S, :], (B, 1)).reshape(R, C).astype(jnp.float32)

    apply_dropout = bool(training) and float(dropout_p) > 0.0

    inputs = [ids_exp, emb_bd, pe]
    in_specs = [
        pl.BlockSpec((R, G * V), lambda i: (i, 0)),
        pl.BlockSpec((G * V, C), lambda i: (0, 0)),
        pl.BlockSpec((R, C), lambda i: (i, 0)),
    ]
    if apply_dropout:
        if rng_key is None:
            rng_key = jax.random.PRNGKey(0)
        bits = jax.random.bits(rng_key, (R, C), dtype=jnp.uint32)
        inputs.append(bits)
        in_specs.append(pl.BlockSpec((R, C), lambda i: (i, 0)))

    kernel = functools.partial(_input_embed_kernel,
                               apply_dropout=apply_dropout,
                               dropout_p=float(dropout_p))

    out = pl.pallas_call(
        kernel,
        out_shape=jax.ShapeDtypeStruct((R, C), jnp.float32),
        grid=(1,),  # single grid step: whole problem fits in a handful of vregs
        in_specs=in_specs,
        out_specs=pl.BlockSpec((R, C), lambda i: (i, 0)),
        compiler_params=pltpu.CompilerParams(dimension_semantics=("parallel",)),
    )(*inputs)

    return out.reshape(B, S, D)


if __name__ == "__main__":
    B, S = 2, 8

    key = jax.random.PRNGKey(0)
    k_emb, k_ids, k_drop = jax.random.split(key, 3)

    # nn.Embedding weight init: N(0, 1)
    emb_table = jax.random.normal(k_emb, (VOCAB_SIZE, D_MODEL), dtype=jnp.float32)
    x_ids = jax.random.randint(k_ids, (B, S), 0, VOCAB_SIZE, dtype=jnp.int32)
    pe_full = _build_positional_encoding(MAX_SEQ_LEN, D_MODEL)

    # Eval-mode run (dropout is identity) — verified against a pure-JAX reference.
    out = input_embeddings(x_ids, emb_table, pe_full, training=False)
    out = jax.block_until_ready(out)

    ref = emb_table[x_ids] + pe_full[None, :S, :]
    assert out.shape == (B, S, D_MODEL)
    assert jnp.allclose(out, ref, atol=1e-5, rtol=1e-5), "eval-mode mismatch vs reference"

    # Train-mode run (inverted dropout, random bits supplied host-side).
    out_train = input_embeddings(x_ids, emb_table, pe_full, training=True, rng_key=k_drop)
    out_train = jax.block_until_ready(out_train)
    assert out_train.shape == (B, S, D_MODEL)
    scale = 1.0 / (1.0 - FF_DROPOUT)
    scaled_ref = ref * scale
    ok = (out_train == 0.0) | (jnp.abs(out_train - scaled_ref) <= 1e-4 * jnp.abs(scaled_ref) + 1e-5)
    assert bool(jnp.all(ok)), "train-mode output violates inverted-dropout property"

    print("KERNEL_OK")
</pallas_src>

<mosaic_0001>
module attributes {stable_mosaic.version = 11 : i64} {
  func.func @_input_embed_kernel(%arg0: i32, %arg1: memref<4x256xi32, #tpu.memory_space<vmem>>, %arg2: memref<256x128xf32, #tpu.memory_space<vmem>>, %arg3: memref<4x128xf32, #tpu.memory_space<vmem>>, %arg4: memref<4x128xf32, #tpu.memory_space<vmem>>) attributes {dimension_semantics = [#tpu.dimension_semantics<parallel>], iteration_bounds = array<i64: 1>, scalar_prefetch = 0 : i64, scratch_operands = 0 : i64, tpu.core_type = #tpu.core_type<tc>, window_params = [{transform_indices = @transform_0, window_bounds = array<i64: 4, 256>}, {pipeline_mode = #tpu.pipeline_mode<synchronous>, transform_indices = @transform_1, window_bounds = array<i64: 256, 128>}, {transform_indices = @transform_2, window_bounds = array<i64: 4, 128>}, {transform_indices = @transform_3, window_bounds = array<i64: 4, 128>}]} {
    %0 = tpu.iota {dimensions = array<i32: 1>} : vector<4x256xi32>
    %c0 = arith.constant 0 : index
    %c0_0 = arith.constant 0 : index
    %1 = vector.load %arg1[%c0, %c0_0] : memref<4x256xi32, #tpu.memory_space<vmem>>, vector<4x256xi32>
    %2 = arith.cmpi eq, %1, %0 : vector<4x256xi32>
    %3 = arith.extui %2 : vector<4x256xi1> to vector<4x256xi32>
    %4 = arith.sitofp %3 : vector<4x256xi32> to vector<4x256xf32>
    %c0_1 = arith.constant 0 : index
    %c0_2 = arith.constant 0 : index
    %5 = vector.load %arg2[%c0_1, %c0_2] : memref<256x128xf32, #tpu.memory_space<vmem>>, vector<256x128xf32>
    %cst = arith.constant dense<0.000000e+00> : vector<4x128xf32>
    %6 = tpu.matmul %4, %5, %cst {dimension_numbers = #tpu.dot_dimension_numbers<[1], [0], [0], [1], [0, 0, 1, 1], [], []>} : vector<4x256xf32>, vector<256x128xf32>, vector<4x128xf32> -> vector<4x128xf32>
    %c0_3 = arith.constant 0 : index
    %c0_4 = arith.constant 0 : index
    %7 = vector.load %arg3[%c0_3, %c0_4] : memref<4x128xf32, #tpu.memory_space<vmem>>, vector<4x128xf32>
    %8 = arith.addf %6, %7 : vector<4x128xf32>
    %c0_5 = arith.constant 0 : index
    %c0_6 = arith.constant 0 : index
    %9 = vector.load %arg4[%c0_5, %c0_6] : memref<4x128xf32, #tpu.memory_space<vmem>>, vector<4x128xf32>
    tpu.vector_store %arg4[%c0_5, %c0_6], %8 {strides = array<i32>} : memref<4x128xf32, #tpu.memory_space<vmem>>, vector<4x128xf32>,
    return
  }
  func.func @transform_0(%arg0: i32) -> (i32, i32) {
    %c0_i32 = arith.constant 0 : i32
    %c0_i32_0 = arith.constant 0 : i32
    return %arg0, %c0_i32 : i32, i32
  }
  func.func @transform_1(%arg0: i32) -> (i32, i32) {
    %c0_i32 = arith.constant 0 : i32
    %c0_i32_0 = arith.constant 0 : i32
    %c0_i32_1 = arith.constant 0 : i32
    return %c0_i32, %c0_i32_0 : i32, i32
  }
  func.func @transform_2(%arg0: i32) -> (i32, i32) {
    %c0_i32 = arith.constant 0 : i32
    %c0_i32_0 = arith.constant 0 : i32
    return %arg0, %c0_i32 : i32, i32
  }
  func.func @transform_3(%arg0: i32) -> (i32, i32) {
    %c0_i32 = arith.constant 0 : i32
    %c0_i32_0 = arith.constant 0 : i32
    return %arg0, %c0_i32 : i32, i32
  }
}

</mosaic_0001>

<bundles_post_ra>
// kernel: tpu_custom_call.1
= control target key start
LH: loop header
LB: loop body
LE: loop exit
PB: predicated region body
PF: predicated region fallthrough
CT: control target
= control target key end

     0   :  { %8 = vsyncpa [#allocation3], 0  ;;  %s362_s0 = inlined_call_operand.hbm [shape: s32[4,256], index: 0, kind: input, shape index: {}]   ;;  %s363_s1 = inlined_call_operand.hbm [shape: f32[256,128], index: 1, kind: input, shape index: {}]   ;;  %s364_s2 = inlined_call_operand.hbm [shape: f32[4,128], index: 2, kind: input, shape index: {}]   ;;  %s365_s3 = inlined_call_operand.hbm [shape: f32[4,128], index: 3, kind: output, shape index: {}]  }
   0x1   :  { %9 = vsyncpa [#allocation6], 0 }
   0x2   :  { %10 = vsyncpa [#allocation4], 0  ;;  %s314_s12 = smov [#allocation5]  }
   0x3   :  { %s26_s13 = sshll.u32 %s314_s12, 4  ;;  %s27_s13 = int_to_ptr.vmem [resolvable:$true] %s26_s13 }
   0x4   :  { %s236_s14 = scalar_lea.vmem %s27_s13, 4096  ;;  %p241_p1 = scmp.lt.s32.totalorder %s27_s13, %s27_s13 }
   0x5   :  { %p237_p0 = scmp.ne.s32.totalorder %s27_s13, %s236_s14  ;;  %p242_p2 = scmp.lt.s32.totalorder %s236_s14, %s236_s14 }
   0x7   :  { %p243_p3 = por %p242_p2, %p241_p1 }
   0x9   :  { %p244_p4 = pnand %p243_p3, %p237_p0 }
   0xb   :  { %247 = shalt.err (!%p244_p4)
}
   0xc   :  { %s315_s15 = smov 128   ;;  %s316_s16 = smov 8  }
   0xd   :  { %32 = dma.hbm_to_vmem [thread:$0]  %s363_s1, 4096, %s27_s13, [#allocation6], %s315_s15, %s315_s15, %s316_s16  }
   0xe   :  { %s317_s19 = smov [#allocation2]   ;;  %s318_s21 = smov [#allocation7]  }
   0xf   :  { %s17_s20 = sshll.u32 %s317_s19, 4  ;;  %s39_s22 = sshll.u32 %s318_s21, 4  ;;  %s18_s20 = int_to_ptr.vmem [resolvable:$true] %s17_s20  ;;  %s40_s22 = int_to_ptr.vmem [resolvable:$true] %s39_s22 }
  0x10   :  { %s256_s23 = scalar_lea.vmem %s18_s20, 128  ;;  %p261_p6 = scmp.lt.s32.totalorder %s18_s20, %s18_s20 }
  0x11   :  { %p257_p5 = scmp.ne.s32.totalorder %s18_s20, %s256_s23  ;;  %p262_p7 = scmp.lt.s32.totalorder %s256_s23, %s256_s23 }
  0x13   :  { %p263_p8 = por %p262_p7, %p261_p6 }
  0x15   :  { %p264_p9 = pnand %p263_p8, %p257_p5 }
  0x17   :  { %267 = shalt.err (!%p264_p9)
}
  0x18   :  { %20 = dma.hbm_to_vmem [thread:$0]  %s362_s0, 128, %s18_s20, [#allocation3]  }
  0x19   :  { %s276_s26 = scalar_lea.vmem %s40_s22, 64  ;;  %p281_p11 = scmp.lt.s32.totalorder %s40_s22, %s40_s22 }
  0x1a   :  { %p277_p10 = scmp.ne.s32.totalorder %s40_s22, %s276_s26  ;;  %p282_p12 = scmp.lt.s32.totalorder %s276_s26, %s276_s26 }
  0x1c   :  { %p283_p13 = por %p282_p12, %p281_p11 }
  0x1e   :  { %p284_p0 = pnand %p283_p13, %p277_p10 }
  0x20   :  { %287 = shalt.err (!%p284_p0)
}
  0x21   :  { %42 = dma.hbm_to_vmem [thread:$0]  %s364_s2, 64, %s40_s22, [#allocation6]  }
  0x22   :  { %308 = dma.done.wait [#allocation3], 128  }
  0x23   :  { %309 = vsyncadd [#allocation3], 4294967168 }
  0x24   :  { %310 = dma.done.wait [#allocation6], 4160  }
  0x25   :  { %311 = vsyncadd [#allocation6], 4294963136  ;;  %v52_v0 = vlaneseq  ;;  %v91_v2 = vld [vmem:[#allocation5 + $0xf8] sm:$0xff]  ;;  %v90_v4 = vld [vmem:[#allocation5 + $0xf0] sm:$0xff]  ;;  %v319_v21 = vmov 0.0   ;;  %v320_v41 = vmov 1.0  }
  0x26   :  { %v75_v3 = vld [vmem:[#allocation5 + $0x78] sm:$0xff]  ;;  %185 = vmatprep.subr.mxu0 %v91_v2  ;;  %v74_v5 = vld [vmem:[#allocation5 + $0x70] sm:$0xff]  ;;  %v89_v6 = vld [vmem:[#allocation5 + $0xe8] sm:$0xff]  ;;  %s321_s0 = smov [#allocation8]  }
  0x27   :  { %v53_v1 = vand.u32 127, %v52_v0  ;;  %186 = vmatpush3.msra.mxu0 %v75_v3  ;;  %v73_v7 = vld [vmem:[#allocation5 + $0x68] sm:$0xff]  ;;  %v88_v9 = vld [vmem:[#allocation5 + $0xe0] sm:$0xff]  ;;  %v87_v11 = vld [vmem:[#allocation5 + $0xd8] sm:$0xff]  ;;  %s173_s2 = sshll.u32 %s321_s0, 4  ;;  %s174_s2 = int_to_ptr.vmem [resolvable:$true] %s173_s2 }
  0x28   :  { %187 = vmatprep.subr.mxu0 %v90_v4  ;;  %v72_v10 = vld [vmem:[#allocation5 + $0x60] sm:$0xff]  ;;  %v71_v12 = vld [vmem:[#allocation5 + $0x58] sm:$0xff]  ;;  %v86_v14 = vld [vmem:[#allocation5 + $0xd0] sm:$0xff]  ;;  %s288_s28 = scalar_lea.vmem %s174_s2, 64  ;;  %p293_p2 = scmp.lt.s32.totalorder %s174_s2, %s174_s2 }
  0x29   :  { %v54_v8 = vadd.s32 128, %v53_v1  ;;  %188 = vmatpush3.msra.mxu0 %v74_v5  ;;  %v70_v15 = vld [vmem:[#allocation5 + $0x50] sm:$0xff]  ;;  %v85_v16 = vld [vmem:[#allocation5 + $0xc8] sm:$0xff]  ;;  %v55_v17 = vld [vmem:[#allocation2] sm:$0xff]  ;;  %p289_p1 = scmp.ne.s32.totalorder %s174_s2, %s288_s28  ;;  %p294_p3 = scmp.lt.s32.totalorder %s288_s28, %s288_s28 }
  0x2a   :  { %189 = vmatprep.subr.mxu0 %v89_v6  ;;  %v69_v18 = vld [vmem:[#allocation5 + $0x48] sm:$0xff]  ;;  %v84_v20 = vld [vmem:[#allocation5 + $0xc0] sm:$0xff]  ;;  %v83_v25 = vld [vmem:[#allocation5 + $0xb8] sm:$0xff] }
  0x2b   :  { %190 = vmatpush3.msra.mxu0 %v73_v7  ;;  %v56_v13 = vcombine.low %v53_v1, %v54_v8  ;;  %v68_v23 = vld [vmem:[#allocation5 + $0x40] sm:$0xff]  ;;  %v67_v26 = vld [vmem:[#allocation5 + $0x38] sm:$0xff]  ;;  %v82_v27 = vld [vmem:[#allocation5 + $0xb0] sm:$0xff]  ;;  %p295_p4 = por %p294_p3, %p293_p2 }
  0x2c   :  { %191 = vmatprep.subr.mxu0 %v88_v9  ;;  %v66_v28 = vld [vmem:[#allocation5 + $0x30] sm:$0xff]  ;;  %v81_v29 = vld [vmem:[#allocation5 + $0xa8] sm:$0xff]  ;;  %v80_v31 = vld [vmem:[#allocation5 + $0xa0] sm:$0xff] }
  0x2d   :  { %192 = vmatpush3.msra.mxu0 %v72_v10  ;;  %vm351_vm0 = vcmp.eq.s32.totalorder %v55_v17, %v56_v13  ;;  %v65_v30 = vld [vmem:[#allocation5 + $0x28] sm:$0xff]  ;;  %v64_v32 = vld [vmem:[#allocation5 + $0x20] sm:$0xff]  ;;  %v79_v33 = vld [vmem:[#allocation5 + $0x98] sm:$0xff]  ;;  %p296_p5 = pnand %p295_p4, %p289_p1 }
  0x2e   :  { %193 = vmatprep.subr.mxu0 %v87_v11  ;;  %v183_v22 = vsel %vm351_vm0, 1.0, %v319_v21  ;;  %v63_v34 = vld [vmem:[#allocation5 + $0x18] sm:$0xff]  ;;  %v78_v35 = vld [vmem:[#allocation5 + $0x90] sm:$0xff]  ;;  %v77_v37 = vld [vmem:[#allocation5 + $0x88] sm:$0xff] }
  0x2f   :  { %194 = vmatpush3.msra.mxu0 %v71_v12  ;;  %v94_v24 = vcombine.high %v183_v22, %v183_v22  ;;  %v62_v36 = vld [vmem:[#allocation5 + $0x10] sm:$0xff]  ;;  %v61_v38 = vld [vmem:[#allocation5 + $0x8] sm:$0xff]  ;;  %v76_v39 = vld [vmem:[#allocation5 + $0x80] sm:$0xff] }
  0x30   :  { %195 = vmatprep.subr.mxu0 %v86_v14  ;;  %v60_v40 = vld [vmem:[#allocation5] sm:$0xff] }
  0x31   :  { %196 = vmatpush3.msra.mxu0 %v70_v15  ;;  %160 = vmatprep.mubr.f32.mxu0 %v94_v24  ;;  %v92_v43 = vld [vmem:[#allocation7] sm:$0xf] }
  0x32   :  { %197 = vmatprep.subr.mxu0 %v85_v16 }
  0x33   :  { %198 = vmatpush3.msra.mxu0 %v69_v18 }
  0x34   :  { %199 = vmatprep.subr.mxu0 %v84_v20 }
  0x35   :  { %200 = vmatpush3.msra.mxu0 %v68_v23 }
  0x36   :  { %201 = vmatprep.subr.mxu0 %v83_v25 }
  0x37   :  { %202 = vmatpush3.msra.mxu0 %v67_v26 }
  0x38   :  { %203 = vmatprep.subr.mxu0 %v82_v27 }
  0x39   :  { %204 = vmatpush3.msra.mxu0 %v66_v28 }
  0x3a   :  { %205 = vmatprep.subr.mxu0 %v81_v29 }
  0x3b   :  { %206 = vmatpush3.msra.mxu0 %v65_v30 }
  0x3c   :  { %207 = vmatprep.subr.mxu0 %v80_v31 }
  0x3d   :  { %208 = vmatpush3.msra.mxu0 %v64_v32 }
  0x3e   :  { %209 = vmatprep.subr.mxu0 %v79_v33 }
  0x3f   :  { %210 = vmatpush3.msra.mxu0 %v63_v34 }
  0x40   :  { %211 = vmatprep.subr.mxu0 %v78_v35 }
  0x41   :  { %212 = vmatpush3.msra.mxu0 %v62_v36 }
  0x42   :  { %213 = vmatprep.subr.mxu0 %v77_v37 }
  0x43   :  { %214 = vmatpush3.msra.mxu0 %v61_v38 }
  0x44   :  { %215 = vmatprep.subr.mxu0 %v76_v39 }
  0x45   :  { %216 = vmatpush3.msra.mxu0 %v60_v40 }
  0x46   :  { %184 = vmatmul.mubr.msk.f32.vlgmr.msra.gmra.mxu0 %vm351_vm0, %v320_v41 }
 0x106   :  { %v217_v42 = vpop.f32.mrf.mxu0 }
 0x108   :  { %v218_v44 = vpop.f32.mrf.mxu0 }
 0x109   :  { %v219_v45 = vadd.f32 %v218_v44, %v217_v42 }
 0x10b   :  { %v163_v46 = vadd.f32 %v219_v45, %v92_v43 }
 0x10d   :  { %166 = vst [vmem:[#allocation8] sm:$0xf] %v163_v46 }
 0x10e   :  { %299 = shalt.err (!%p296_p5)
}
 0x10f   :  { %176 = dma.vmem_to_hbm [thread:$0]  %s174_s2, 64, %s365_s3, [#allocation4]  }
 0x110   :  { %312 = dma.done.wait [#allocation4], 64  }
 0x111   :  { %313 = vsyncadd [#allocation4], 4294967232 }
 0x112   :  { %180 = vsyncpa [#allocation3], 1 }
 0x113   :  { %181 = vsyncpa [#allocation6], 1 }
 0x114   :  { %182 = vsyncpa [#allocation4], 1 }

</bundles_post_ra>
